<compile_context>
chip_gen: v5e
topology: v5e:2x2
jax: 0.10.0
libtpu: 0.0.40
codegen_flags: <defaults>
</compile_context>

<pallas_src>
import functools

import jax
import jax.numpy as jnp
from jax.experimental import pallas as pl
from jax.experimental.pallas import tpu as pltpu


# ----------------------------------------------------------------------------
# Pallas kernel: whole ActorCritic forward for one batch tile.
# ----------------------------------------------------------------------------
def actor_critic_kernel(x_ref, w_ref, b_ref, out_ref, *, action_dim):
    f32 = jnp.float32
    bf16 = jnp.bfloat16

    def layer(v, k, relu=True):
        # k-th 128x128 bf16 weight block + k-th f32 bias row (zero-padded).
        w = w_ref[k * 128:(k + 1) * 128, :]
        b = b_ref[k:k + 1, :]
        # bf16 inputs on the MXU, f32 accumulation; elementwise stays f32.
        y = jnp.dot(v.astype(bf16), w, preferred_element_type=f32) + b
        return jnp.maximum(y, 0.0) if relu else y

    x = x_ref[...]                        # odom @ lanes 16:18, lidar @ 64:64+L

    # --- LocalNotion: per-2-element Block MLPs as block-diagonal matmuls ----
    z = layer(x, 0)                       # Block.layer1 (2->2 per block) + ReLU
    z = layer(z, 1)                       # Block.layer2 (2->4 per block) + ReLU
    # --- LocalNotion.net ----------------------------------------------------
    z = layer(z, 2)                       # Linear(4*nb, 32) + ReLU
    z = layer(z, 3)                       # Linear(32, 16)  + ReLU
    z = layer(z, 4)                       # Linear(16, 16)  + ReLU
    h = layer(z, 5)                       # Linear(16, 16)  + ReLU (lanes 0:16)

    # --- ActorCritic.net: Linear(18,32) on cat(h, odom) fused into one block.
    # x carries odom at lanes 16:18 (h is zero there) -> add == concat; the
    # lidar lanes (>= 64) hit all-zero weight rows so they contribute nothing.
    y = layer(h + x, 6)                   # Linear(18, 32) + ReLU
    y = layer(y, 7)                       # Linear(32, 16) + ReLU

    # --- fused actor/critic heads ------------------------------------------
    ac = layer(y, 8)                      # [actor8 | critic8] = Linear(16,16)+ReLU
    out = layer(ac, 9, relu=False)        # lanes 0:A = logits, lane A = critic

    # Masked softmax over the action lanes; keep critic value at lane A.
    # Masks are (1,128) and broadcast over the batch tile.
    lane = jax.lax.broadcasted_iota(jnp.int32, (1, 128), 1)
    is_logit = lane < action_dim
    is_critic = lane == action_dim
    masked = jnp.where(is_logit, out, jnp.float32(-1e30))
    m = jnp.max(masked, axis=-1, keepdims=True)
    e = jnp.where(is_logit, jnp.exp(out - m), 0.0)
    s = jnp.sum(e, axis=-1, keepdims=True)
    probs = e / s                         # exact normalization (rows sum to 1)
    out_ref[...] = jnp.where(is_logit, probs,
                             jnp.where(is_critic, out, 0.0))


# ----------------------------------------------------------------------------
# Parameter construction (deterministic, PyTorch-default-style uniform init)
# ----------------------------------------------------------------------------
def _linear_params(key, in_dim, out_dim):
    kw, kb = jax.random.split(key)
    bound = 1.0 / jnp.sqrt(jnp.float32(in_dim))
    w = jax.random.uniform(kw, (in_dim, out_dim), jnp.float32, -bound, bound)
    b = jax.random.uniform(kb, (1, out_dim), jnp.float32, -bound, bound)
    return w, b


def make_params(key, state_dim, action_dim):
    L = state_dim - 2          # lidar dim
    assert L >= 2 and L % 2 == 0, "lidar dim (state_dim - 2) must be even"
    assert L <= 64, "this packed kernel assumes lidar dim <= 64 (fits lanes 64:128)"
    assert action_dim + 1 <= 128
    nb = L // 2                # number of Block() sub-MLPs
    f1, f2, f3, f4 = 32, 16, 16, 16
    g1, g2, g3 = 32, 16, 8

    keys = iter(jax.random.split(key, 2 * nb + 10))
    p = {}

    # Per-block weights (each Block has its own params), block-diagonalized.
    # TODO(synk): for large lidar dims store per-block weights compactly
    # instead of a dense O(L^2) block-diagonal matrix.
    bw1 = jnp.zeros((L, L), jnp.float32)
    bb1 = jnp.zeros((1, L), jnp.float32)
    bw2 = jnp.zeros((L, 4 * nb), jnp.float32)
    bb2 = jnp.zeros((1, 4 * nb), jnp.float32)
    for b in range(nb):
        w1, b1 = _linear_params(next(keys), 2, 2)   # Block.layer1
        w2, b2 = _linear_params(next(keys), 2, 4)   # Block.layer2
        bw1 = bw1.at[2 * b:2 * b + 2, 2 * b:2 * b + 2].set(w1)
        bb1 = bb1.at[:, 2 * b:2 * b + 2].set(b1)
        bw2 = bw2.at[2 * b:2 * b + 2, 4 * b:4 * b + 4].set(w2)
        bb2 = bb2.at[:, 4 * b:4 * b + 4].set(b2)
    p["bw1"], p["bb1"], p["bw2"], p["bb2"] = bw1, bb1, bw2, bb2

    # LocalNotion.net
    p["lw1"], p["lb1"] = _linear_params(next(keys), 4 * nb, f1)
    p["lw2"], p["lb2"] = _linear_params(next(keys), f1, f2)
    p["lw3"], p["lb3"] = _linear_params(next(keys), f2, f3)
    p["lw4"], p["lb4"] = _linear_params(next(keys), f3, f4)

    # ActorCritic.net : Linear(f4 + 2, g1) -> split rows for h and odom
    nw1, p["nb1"] = _linear_params(next(keys), f4 + 2, g1)
    p["nwh"], p["nwo"] = nw1[:f4, :], nw1[f4:, :]
    p["nw2"], p["nb2"] = _linear_params(next(keys), g1, g2)

    # actor / critic heads
    p["aw1"], p["ab1"] = _linear_params(next(keys), g2, g3)
    p["aw2"], p["ab2"] = _linear_params(next(keys), g3, action_dim)
    p["cw1"], p["cb1"] = _linear_params(next(keys), g2, g3)
    p["cw2"], p["cb2"] = _linear_params(next(keys), g3, 1)
    return p


NUM_W_BLOCKS = 10  # ten fused linear layers in the kernel
LIDAR_LANE = 64    # lanes [64, 64+L) carry lidar in the merged input slab
ODOM_LANE = 16     # lanes [16, 18) carry odom (where cat(h, odom) needs them)


def pack_params(p, state_dim, action_dim):
    """Pack all logical params into one bf16 weight slab and one f32 bias slab."""
    L = state_dim - 2
    nb = L // 2
    assert 4 * nb <= 128 and LIDAR_LANE + L <= 128

    w = jnp.zeros((NUM_W_BLOCKS * 128, 128), jnp.float32)
    b = jnp.zeros((16, 128), jnp.float32)

    def put_w(slab, k, mat, r0=0, c0=0):
        return slab.at[k * 128 + r0:k * 128 + r0 + mat.shape[0],
                       c0:c0 + mat.shape[1]].set(mat)

    def put_b(slab, i, vec, c0=0):
        v = vec.reshape(-1)
        return slab.at[i, c0:c0 + v.shape[0]].set(v)

    w = put_w(w, 0, p["bw1"], r0=LIDAR_LANE)          # block-diag layer1 (lidar rows)
    w = put_w(w, 1, p["bw2"])                         # block-diag layer2
    w = put_w(w, 2, p["lw1"])
    w = put_w(w, 3, p["lw2"])
    w = put_w(w, 4, p["lw3"])
    w = put_w(w, 5, p["lw4"])
    w = put_w(w, 6, p["nwh"])                         # rows 0:16  (h lanes)
    w = put_w(w, 6, p["nwo"], r0=ODOM_LANE)           # rows 16:18 (odom lanes)
    w = put_w(w, 7, p["nw2"])
    w = put_w(w, 8, p["aw1"])                         # cols 0:8  -> actor branch
    w = put_w(w, 8, p["cw1"], c0=8)                   # cols 8:16 -> critic branch
    w = put_w(w, 9, p["aw2"])                         # rows 0:8, cols 0:A
    w = put_w(w, 9, p["cw2"], r0=8, c0=action_dim)    # rows 8:16, col  A

    b = put_b(b, 0, p["bb1"])
    b = put_b(b, 1, p["bb2"])
    b = put_b(b, 2, p["lb1"])
    b = put_b(b, 3, p["lb2"])
    b = put_b(b, 4, p["lb3"])
    b = put_b(b, 5, p["lb4"])
    b = put_b(b, 6, p["nb1"])
    b = put_b(b, 7, p["nb2"])
    b = put_b(b, 8, p["ab1"])
    b = put_b(b, 8, p["cb1"], c0=8)
    b = put_b(b, 9, p["ab2"])
    b = put_b(b, 9, p["cb2"], c0=action_dim)
    # bf16 weights for the MXU; zero padding is exact in bf16. Biases stay f32.
    return w.astype(jnp.bfloat16), b


# ----------------------------------------------------------------------------
# Wrapper: batched (or single-state) forward through the Pallas kernel.
# ----------------------------------------------------------------------------
@functools.partial(jax.jit, static_argnames=("action_dim", "b_tile"))
def actor_critic_forward(x, w_slab, b_slab, action_dim, b_tile=512):
    x = jnp.asarray(x, jnp.float32)
    single = x.ndim == 1
    if single:
        x = x[None, :]
    B, state_dim = x.shape
    L = state_dim - 2

    # Batch tile: multiple of 8 sublanes, capped at b_tile, and ~ceil(B/2) so
    # batches with more than 8 rows produce >= 2 grid steps (both v7x TCs).
    t = min(b_tile, max(8, ((-(-B // 2)) + 7) // 8 * 8))
    Bp = -(-B // t) * t

    # Single merged, lane-aligned input slab (one padded buffer, two scatters):
    #   odom  -> lanes [16, 18)     lidar -> lanes [64, 64+L)
    x_p = (jnp.zeros((Bp, 128), jnp.float32)
           .at[:B, ODOM_LANE:ODOM_LANE + 2].set(x[:, :2])
           .at[:B, LIDAR_LANE:LIDAR_LANE + L].set(x[:, 2:]))

    kernel = functools.partial(actor_critic_kernel, action_dim=action_dim)
    out = pl.pallas_call(
        kernel,
        out_shape=jax.ShapeDtypeStruct((Bp, 128), jnp.float32),
        grid_spec=pltpu.PrefetchScalarGridSpec(
            num_scalar_prefetch=0,
            grid=(Bp // t,),
            in_specs=[
                pl.BlockSpec((t, 128), lambda i: (i, 0)),        # merged input
                pl.BlockSpec(w_slab.shape, lambda i: (0, 0)),    # bf16 weights (resident)
                pl.BlockSpec(b_slab.shape, lambda i: (0, 0)),    # f32 biases  (resident)
            ],
            out_specs=pl.BlockSpec((t, 128), lambda i: (i, 0)),
        ),
        compiler_params=pltpu.CompilerParams(
            dimension_semantics=("parallel",)),
    )(x_p, w_slab, b_slab)

    actor = out[:B, :action_dim]
    critic = out[:B, action_dim:action_dim + 1]
    if single:
        return actor[0], critic[0]
    return actor, critic


# ----------------------------------------------------------------------------
# Pure-JAX reference (literal translation of the PyTorch forward) for checking
# ----------------------------------------------------------------------------
def reference_forward(x, params):
    relu = lambda v: jnp.maximum(v, 0.0)
    odom, lidar = x[:2], x[2:]
    z = relu(lidar @ params["bw1"] + params["bb1"][0])
    z = relu(z @ params["bw2"] + params["bb2"][0])
    z = relu(z @ params["lw1"] + params["lb1"][0])
    z = relu(z @ params["lw2"] + params["lb2"][0])
    z = relu(z @ params["lw3"] + params["lb3"][0])
    h = relu(z @ params["lw4"] + params["lb4"][0])
    y = relu(h @ params["nwh"] + odom @ params["nwo"] + params["nb1"][0])
    y = relu(y @ params["nw2"] + params["nb2"][0])
    a = relu(y @ params["aw1"] + params["ab1"][0])
    logits = a @ params["aw2"] + params["ab2"][0]
    actor = jax.nn.softmax(logits, axis=0)      # Softmax(dim=0) on 1-D logits
    c = relu(y @ params["cw1"] + params["cb1"][0])
    critic = c @ params["cw2"] + params["cb2"][0]
    return actor, critic


if __name__ == "__main__":
    state_dim = 10      # -> lidar dim 8 -> 4 Block() sub-MLPs
    action_dim = 4
    batch = 4           # batched states (each row = one module forward)

    key = jax.random.PRNGKey(0)
    kx, kp = jax.random.split(key)
    x = jax.random.normal(kx, (batch, state_dim), jnp.float32)
    params = make_params(kp, state_dim, action_dim)
    w_slab, b_slab = pack_params(params, state_dim, action_dim)

    actor, critic = actor_critic_forward(x, w_slab, b_slab,
                                         action_dim=action_dim)
    jax.block_until_ready((actor, critic))

    ref_actor, ref_critic = jax.vmap(reference_forward, in_axes=(0, None))(
        x, params)

    assert actor.shape == (batch, action_dim) and critic.shape == (batch, 1)
    # Tolerances cover bf16 matmul inputs (f32 reference, f32 accumulation).
    assert jnp.allclose(actor, ref_actor, atol=1e-2), (actor, ref_actor)
    assert jnp.allclose(critic, ref_critic, atol=1e-2), (critic, ref_critic)
    # Softmax is normalized exactly in f32.
    assert jnp.allclose(jnp.sum(actor, axis=-1), 1.0, atol=1e-4)

    print("KERNEL_OK")
</pallas_src>

<mosaic_0001>
module attributes {stable_mosaic.version = 11 : i64} {
  func.func @actor_critic_kernel(%arg0: i32, %arg1: memref<8x128xf32, #tpu.memory_space<vmem>>, %arg2: memref<1280x128xbf16, #tpu.memory_space<vmem>>, %arg3: memref<16x128xf32, #tpu.memory_space<vmem>>, %arg4: memref<8x128xf32, #tpu.memory_space<vmem>>) attributes {dimension_semantics = [#tpu.dimension_semantics<parallel>], iteration_bounds = array<i64: 1>, scalar_prefetch = 0 : i64, scratch_operands = 0 : i64, tpu.core_type = #tpu.core_type<tc>, window_params = [{transform_indices = @transform_0, window_bounds = array<i64: 8, 128>}, {pipeline_mode = #tpu.pipeline_mode<synchronous>, transform_indices = @transform_1, window_bounds = array<i64: 1280, 128>}, {pipeline_mode = #tpu.pipeline_mode<synchronous>, transform_indices = @transform_2, window_bounds = array<i64: 16, 128>}, {transform_indices = @transform_3, window_bounds = array<i64: 8, 128>}]} {
    %c0 = arith.constant 0 : index
    %c0_0 = arith.constant 0 : index
    %0 = vector.load %arg1[%c0, %c0_0] : memref<8x128xf32, #tpu.memory_space<vmem>>, vector<8x128xf32>
    %c0_1 = arith.constant 0 : index
    %c0_2 = arith.constant 0 : index
    %1 = vector.load %arg2[%c0_1, %c0_2] : memref<1280x128xbf16, #tpu.memory_space<vmem>>, vector<128x128xbf16>
    %c0_3 = arith.constant 0 : index
    %c0_4 = arith.constant 0 : index
    %2 = vector.load %arg3[%c0_3, %c0_4] : memref<16x128xf32, #tpu.memory_space<vmem>>, vector<1x128xf32>
    %3 = arith.truncf %0 : vector<8x128xf32> to vector<8x128xbf16>
    %cst = arith.constant dense<0.000000e+00> : vector<8x128xf32>
    %4 = tpu.matmul %3, %1, %cst {dimension_numbers = #tpu.dot_dimension_numbers<[1], [0], [0], [1], [0, 0, 1, 1], [], []>} : vector<8x128xbf16>, vector<128x128xbf16>, vector<8x128xf32> -> vector<8x128xf32>
    %5 = vector.broadcast %2 : vector<1x128xf32> to vector<8x128xf32>
    %6 = arith.addf %4, %5 : vector<8x128xf32>
    %cst_5 = arith.constant 0.000000e+00 : f32
    %7 = vector.broadcast %cst_5 : f32 to vector<8x128xf32>
    %8 = arith.maximumf %6, %7 : vector<8x128xf32>
    %c128 = arith.constant 128 : index
    %c0_6 = arith.constant 0 : index
    %9 = vector.load %arg2[%c128, %c0_6] : memref<1280x128xbf16, #tpu.memory_space<vmem>>, vector<128x128xbf16>
    %c1 = arith.constant 1 : index
    %c0_7 = arith.constant 0 : index
    %10 = vector.load %arg3[%c1, %c0_7] : memref<16x128xf32, #tpu.memory_space<vmem>>, vector<1x128xf32>
    %11 = arith.truncf %8 : vector<8x128xf32> to vector<8x128xbf16>
    %cst_8 = arith.constant dense<0.000000e+00> : vector<8x128xf32>
    %12 = tpu.matmul %11, %9, %cst_8 {dimension_numbers = #tpu.dot_dimension_numbers<[1], [0], [0], [1], [0, 0, 1, 1], [], []>} : vector<8x128xbf16>, vector<128x128xbf16>, vector<8x128xf32> -> vector<8x128xf32>
    %13 = vector.broadcast %10 : vector<1x128xf32> to vector<8x128xf32>
    %14 = arith.addf %12, %13 : vector<8x128xf32>
    %cst_9 = arith.constant 0.000000e+00 : f32
    %15 = vector.broadcast %cst_9 : f32 to vector<8x128xf32>
    %16 = arith.maximumf %14, %15 : vector<8x128xf32>
    %c256 = arith.constant 256 : index
    %c0_10 = arith.constant 0 : index
    %17 = vector.load %arg2[%c256, %c0_10] : memref<1280x128xbf16, #tpu.memory_space<vmem>>, vector<128x128xbf16>
    %c2 = arith.constant 2 : index
    %c0_11 = arith.constant 0 : index
    %18 = vector.load %arg3[%c2, %c0_11] : memref<16x128xf32, #tpu.memory_space<vmem>>, vector<1x128xf32>
    %19 = arith.truncf %16 : vector<8x128xf32> to vector<8x128xbf16>
    %cst_12 = arith.constant dense<0.000000e+00> : vector<8x128xf32>
    %20 = tpu.matmul %19, %17, %cst_12 {dimension_numbers = #tpu.dot_dimension_numbers<[1], [0], [0], [1], [0, 0, 1, 1], [], []>} : vector<8x128xbf16>, vector<128x128xbf16>, vector<8x128xf32> -> vector<8x128xf32>
    %21 = vector.broadcast %18 : vector<1x128xf32> to vector<8x128xf32>
    %22 = arith.addf %20, %21 : vector<8x128xf32>
    %cst_13 = arith.constant 0.000000e+00 : f32
    %23 = vector.broadcast %cst_13 : f32 to vector<8x128xf32>
    %24 = arith.maximumf %22, %23 : vector<8x128xf32>
    %c384 = arith.constant 384 : index
    %c0_14 = arith.constant 0 : index
    %25 = vector.load %arg2[%c384, %c0_14] : memref<1280x128xbf16, #tpu.memory_space<vmem>>, vector<128x128xbf16>
    %c3 = arith.constant 3 : index
    %c0_15 = arith.constant 0 : index
    %26 = vector.load %arg3[%c3, %c0_15] : memref<16x128xf32, #tpu.memory_space<vmem>>, vector<1x128xf32>
    %27 = arith.truncf %24 : vector<8x128xf32> to vector<8x128xbf16>
    %cst_16 = arith.constant dense<0.000000e+00> : vector<8x128xf32>
    %28 = tpu.matmul %27, %25, %cst_16 {dimension_numbers = #tpu.dot_dimension_numbers<[1], [0], [0], [1], [0, 0, 1, 1], [], []>} : vector<8x128xbf16>, vector<128x128xbf16>, vector<8x128xf32> -> vector<8x128xf32>
    %29 = vector.broadcast %26 : vector<1x128xf32> to vector<8x128xf32>
    %30 = arith.addf %28, %29 : vector<8x128xf32>
    %cst_17 = arith.constant 0.000000e+00 : f32
    %31 = vector.broadcast %cst_17 : f32 to vector<8x128xf32>
    %32 = arith.maximumf %30, %31 : vector<8x128xf32>
    %c512 = arith.constant 512 : index
    %c0_18 = arith.constant 0 : index
    %33 = vector.load %arg2[%c512, %c0_18] : memref<1280x128xbf16, #tpu.memory_space<vmem>>, vector<128x128xbf16>
    %c4 = arith.constant 4 : index
    %c0_19 = arith.constant 0 : index
    %34 = vector.load %arg3[%c4, %c0_19] : memref<16x128xf32, #tpu.memory_space<vmem>>, vector<1x128xf32>
    %35 = arith.truncf %32 : vector<8x128xf32> to vector<8x128xbf16>
    %cst_20 = arith.constant dense<0.000000e+00> : vector<8x128xf32>
    %36 = tpu.matmul %35, %33, %cst_20 {dimension_numbers = #tpu.dot_dimension_numbers<[1], [0], [0], [1], [0, 0, 1, 1], [], []>} : vector<8x128xbf16>, vector<128x128xbf16>, vector<8x128xf32> -> vector<8x128xf32>
    %37 = vector.broadcast %34 : vector<1x128xf32> to vector<8x128xf32>
    %38 = arith.addf %36, %37 : vector<8x128xf32>
    %cst_21 = arith.constant 0.000000e+00 : f32
    %39 = vector.broadcast %cst_21 : f32 to vector<8x128xf32>
    %40 = arith.maximumf %38, %39 : vector<8x128xf32>
    %c640 = arith.constant 640 : index
    %c0_22 = arith.constant 0 : index
    %41 = vector.load %arg2[%c640, %c0_22] : memref<1280x128xbf16, #tpu.memory_space<vmem>>, vector<128x128xbf16>
    %c5 = arith.constant 5 : index
    %c0_23 = arith.constant 0 : index
    %42 = vector.load %arg3[%c5, %c0_23] : memref<16x128xf32, #tpu.memory_space<vmem>>, vector<1x128xf32>
    %43 = arith.truncf %40 : vector<8x128xf32> to vector<8x128xbf16>
    %cst_24 = arith.constant dense<0.000000e+00> : vector<8x128xf32>
    %44 = tpu.matmul %43, %41, %cst_24 {dimension_numbers = #tpu.dot_dimension_numbers<[1], [0], [0], [1], [0, 0, 1, 1], [], []>} : vector<8x128xbf16>, vector<128x128xbf16>, vector<8x128xf32> -> vector<8x128xf32>
    %45 = vector.broadcast %42 : vector<1x128xf32> to vector<8x128xf32>
    %46 = arith.addf %44, %45 : vector<8x128xf32>
    %cst_25 = arith.constant 0.000000e+00 : f32
    %47 = vector.broadcast %cst_25 : f32 to vector<8x128xf32>
    %48 = arith.maximumf %46, %47 : vector<8x128xf32>
    %49 = arith.addf %48, %0 : vector<8x128xf32>
    %c768 = arith.constant 768 : index
    %c0_26 = arith.constant 0 : index
    %50 = vector.load %arg2[%c768, %c0_26] : memref<1280x128xbf16, #tpu.memory_space<vmem>>, vector<128x128xbf16>
    %c6 = arith.constant 6 : index
    %c0_27 = arith.constant 0 : index
    %51 = vector.load %arg3[%c6, %c0_27] : memref<16x128xf32, #tpu.memory_space<vmem>>, vector<1x128xf32>
    %52 = arith.truncf %49 : vector<8x128xf32> to vector<8x128xbf16>
    %cst_28 = arith.constant dense<0.000000e+00> : vector<8x128xf32>
    %53 = tpu.matmul %52, %50, %cst_28 {dimension_numbers = #tpu.dot_dimension_numbers<[1], [0], [0], [1], [0, 0, 1, 1], [], []>} : vector<8x128xbf16>, vector<128x128xbf16>, vector<8x128xf32> -> vector<8x128xf32>
    %54 = vector.broadcast %51 : vector<1x128xf32> to vector<8x128xf32>
    %55 = arith.addf %53, %54 : vector<8x128xf32>
    %cst_29 = arith.constant 0.000000e+00 : f32
    %56 = vector.broadcast %cst_29 : f32 to vector<8x128xf32>
    %57 = arith.maximumf %55, %56 : vector<8x128xf32>
    %c896 = arith.constant 896 : index
    %c0_30 = arith.constant 0 : index
    %58 = vector.load %arg2[%c896, %c0_30] : memref<1280x128xbf16, #tpu.memory_space<vmem>>, vector<128x128xbf16>
    %c7 = arith.constant 7 : index
    %c0_31 = arith.constant 0 : index
    %59 = vector.load %arg3[%c7, %c0_31] : memref<16x128xf32, #tpu.memory_space<vmem>>, vector<1x128xf32>
    %60 = arith.truncf %57 : vector<8x128xf32> to vector<8x128xbf16>
    %cst_32 = arith.constant dense<0.000000e+00> : vector<8x128xf32>
    %61 = tpu.matmul %60, %58, %cst_32 {dimension_numbers = #tpu.dot_dimension_numbers<[1], [0], [0], [1], [0, 0, 1, 1], [], []>} : vector<8x128xbf16>, vector<128x128xbf16>, vector<8x128xf32> -> vector<8x128xf32>
    %62 = vector.broadcast %59 : vector<1x128xf32> to vector<8x128xf32>
    %63 = arith.addf %61, %62 : vector<8x128xf32>
    %cst_33 = arith.constant 0.000000e+00 : f32
    %64 = vector.broadcast %cst_33 : f32 to vector<8x128xf32>
    %65 = arith.maximumf %63, %64 : vector<8x128xf32>
    %c1024 = arith.constant 1024 : index
    %c0_34 = arith.constant 0 : index
    %66 = vector.load %arg2[%c1024, %c0_34] : memref<1280x128xbf16, #tpu.memory_space<vmem>>, vector<128x128xbf16>
    %c8 = arith.constant 8 : index
    %c0_35 = arith.constant 0 : index
    %67 = vector.load %arg3[%c8, %c0_35] : memref<16x128xf32, #tpu.memory_space<vmem>>, vector<1x128xf32>
    %68 = arith.truncf %65 : vector<8x128xf32> to vector<8x128xbf16>
    %cst_36 = arith.constant dense<0.000000e+00> : vector<8x128xf32>
    %69 = tpu.matmul %68, %66, %cst_36 {dimension_numbers = #tpu.dot_dimension_numbers<[1], [0], [0], [1], [0, 0, 1, 1], [], []>} : vector<8x128xbf16>, vector<128x128xbf16>, vector<8x128xf32> -> vector<8x128xf32>
    %70 = vector.broadcast %67 : vector<1x128xf32> to vector<8x128xf32>
    %71 = arith.addf %69, %70 : vector<8x128xf32>
    %cst_37 = arith.constant 0.000000e+00 : f32
    %72 = vector.broadcast %cst_37 : f32 to vector<8x128xf32>
    %73 = arith.maximumf %71, %72 : vector<8x128xf32>
    %c1152 = arith.constant 1152 : index
    %c0_38 = arith.constant 0 : index
    %74 = vector.load %arg2[%c1152, %c0_38] : memref<1280x128xbf16, #tpu.memory_space<vmem>>, vector<128x128xbf16>
    %c9 = arith.constant 9 : index
    %c0_39 = arith.constant 0 : index
    %75 = vector.load %arg3[%c9, %c0_39] : memref<16x128xf32, #tpu.memory_space<vmem>>, vector<1x128xf32>
    %76 = arith.truncf %73 : vector<8x128xf32> to vector<8x128xbf16>
    %cst_40 = arith.constant dense<0.000000e+00> : vector<8x128xf32>
    %77 = tpu.matmul %76, %74, %cst_40 {dimension_numbers = #tpu.dot_dimension_numbers<[1], [0], [0], [1], [0, 0, 1, 1], [], []>} : vector<8x128xbf16>, vector<128x128xbf16>, vector<8x128xf32> -> vector<8x128xf32>
    %78 = vector.broadcast %75 : vector<1x128xf32> to vector<8x128xf32>
    %79 = arith.addf %77, %78 : vector<8x128xf32>
    %80 = tpu.iota {dimensions = array<i32: 1>} : vector<1x128xi32>
    %c4_i32 = arith.constant 4 : i32
    %81 = vector.broadcast %c4_i32 : i32 to vector<1x128xi32>
    %82 = arith.cmpi slt, %80, %81 : vector<1x128xi32>
    %c4_i32_41 = arith.constant 4 : i32
    %83 = vector.broadcast %c4_i32_41 : i32 to vector<1x128xi32>
    %84 = arith.cmpi eq, %80, %83 : vector<1x128xi32>
    %cst_42 = arith.constant -1.000000e+30 : f32
    %85 = vector.shape_cast %82 : vector<1x128xi1> to vector<1x128xi1>
    %86 = vector.broadcast %85 : vector<1x128xi1> to vector<8x128xi1>
    %87 = vector.broadcast %cst_42 : f32 to vector<8x128xf32>
    %88 = arith.select %86, %79, %87 : vector<8x128xi1>, vector<8x128xf32>
    %cst_43 = arith.constant dense<0xFF800000> : vector<8xf32>
    %89 = vector.multi_reduction <maximumf>, %88, %cst_43 [1] : vector<8x128xf32> to vector<8xf32>
    %90 = vector.shape_cast %89 : vector<8xf32> to vector<8x1xf32>
    %91 = vector.broadcast %90 : vector<8x1xf32> to vector<8x128xf32>
    %92 = arith.subf %79, %91 : vector<8x128xf32>
    %93 = math.exp %92 : vector<8x128xf32>
    %cst_44 = arith.constant 0.000000e+00 : f32
    %94 = vector.shape_cast %82 : vector<1x128xi1> to vector<1x128xi1>
    %95 = vector.broadcast %94 : vector<1x128xi1> to vector<8x128xi1>
    %96 = vector.broadcast %cst_44 : f32 to vector<8x128xf32>
    %97 = arith.select %95, %93, %96 : vector<8x128xi1>, vector<8x128xf32>
    %cst_45 = arith.constant dense<0.000000e+00> : vector<8xf32>
    %98 = vector.multi_reduction <add>, %97, %cst_45 [1] : vector<8x128xf32> to vector<8xf32>
    %99 = vector.shape_cast %98 : vector<8xf32> to vector<8x1xf32>
    %100 = vector.broadcast %99 : vector<8x1xf32> to vector<8x128xf32>
    %101 = arith.divf %97, %100 : vector<8x128xf32>
    %cst_46 = arith.constant 0.000000e+00 : f32
    %102 = vector.shape_cast %84 : vector<1x128xi1> to vector<1x128xi1>
    %103 = vector.broadcast %102 : vector<1x128xi1> to vector<8x128xi1>
    %104 = vector.broadcast %cst_46 : f32 to vector<8x128xf32>
    %105 = arith.select %103, %79, %104 : vector<8x128xi1>, vector<8x128xf32>
    %106 = vector.shape_cast %82 : vector<1x128xi1> to vector<1x128xi1>
    %107 = vector.broadcast %106 : vector<1x128xi1> to vector<8x128xi1>
    %108 = arith.select %107, %101, %105 : vector<8x128xi1>, vector<8x128xf32>
    %c0_47 = arith.constant 0 : index
    %c0_48 = arith.constant 0 : index
    %109 = vector.load %arg4[%c0_47, %c0_48] : memref<8x128xf32, #tpu.memory_space<vmem>>, vector<8x128xf32>
    tpu.vector_store %arg4[%c0_47, %c0_48], %108 {strides = array<i32>} : memref<8x128xf32, #tpu.memory_space<vmem>>, vector<8x128xf32>,
    return
  }
  func.func @transform_0(%arg0: i32) -> (i32, i32) {
    %c0_i32 = arith.constant 0 : i32
    %c0_i32_0 = arith.constant 0 : i32
    return %arg0, %c0_i32 : i32, i32
  }
  func.func @transform_1(%arg0: i32) -> (i32, i32) {
    %c0_i32 = arith.constant 0 : i32
    %c0_i32_0 = arith.constant 0 : i32
    %c0_i32_1 = arith.constant 0 : i32
    return %c0_i32, %c0_i32_0 : i32, i32
  }
  func.func @transform_2(%arg0: i32) -> (i32, i32) {
    %c0_i32 = arith.constant 0 : i32
    %c0_i32_0 = arith.constant 0 : i32
    %c0_i32_1 = arith.constant 0 : i32
    return %c0_i32, %c0_i32_0 : i32, i32
  }
  func.func @transform_3(%arg0: i32) -> (i32, i32) {
    %c0_i32 = arith.constant 0 : i32
    %c0_i32_0 = arith.constant 0 : i32
    return %arg0, %c0_i32 : i32, i32
  }
}

</mosaic_0001>

<bundles_post_ra>
// kernel: actor_critic_forward.1
= control target key start
LH: loop header
LB: loop body
LE: loop exit
PB: predicated region body
PF: predicated region fallthrough
CT: control target
= control target key end

     0   :  { %8 = vsyncpa [#allocation3], 0  ;;  %s1324_s15 = smov [#allocation2]   ;;  %s1325_s17 = smov 64   ;;  %s1394_s0 = inlined_call_operand.vmem [shape: f32[8,128], index: 0, kind: input, shape index: {}]   ;;  %s1395_s1 = inlined_call_operand.hbm [shape: bf16[1280,128], index: 1, kind: input, shape index: {}]   ;;  %s1396_s2 = inlined_call_operand.vmem [shape: f32[16,128], index: 2, kind: input, shape index: {}]   ;;  %s1397_s3 = inlined_call_operand.vmem [shape: f32[8,128], index: 3, kind: output, shape index: {}]  }
   0x1   :  { %s15_s14 = sshll.u32 %s1395_s1, 4  ;;  %s17_s16 = sshll.u32 %s1324_s15, 4  ;;  %s16_s14 = int_to_ptr.hbm [resolvable:$true] %s15_s14  ;;  %s18_s16 = int_to_ptr.vmem [resolvable:$true] %s17_s16 }
   0x2   :  { %s1326_s18 = smov 4  }
   0x3   :  { %23 = dma.hbm_to_vmem [thread:$0]  %s16_s14, 10240, %s18_s16, [#allocation3], %s1325_s17, %s1325_s17, %s1326_s18  }
   0x4   :  { %1322 = dma.done.wait [#allocation3], 10240  }
   0x5   :  { %1323 = vsyncadd [#allocation3], 4294957056  ;;  %v1208_v0 = vld [vmem:[#allocation2 + $0x38] sm:$0xff]  ;;  %v1207_v1 = vld [vmem:[#allocation2 + $0x30] sm:$0xff] }
   0x6   :  { %98 = vmatpush.bf16.msra.mxu0 %v1208_v0  ;;  %v1216_v2 = vld [vmem:[#allocation2 + $0x78] sm:$0xff]  ;;  %v1206_v3 = vld [vmem:[#allocation2 + $0x28] sm:$0xff]  ;;  %v1215_v4 = vld [vmem:[#allocation2 + $0x70] sm:$0xff] }
   0x7   :  { %179 = vmatpush.bf16.msra.mxu1 %v1216_v2  ;;  %v1214_v5 = vld [vmem:[#allocation2 + $0x68] sm:$0xff]  ;;  %v1205_v6 = vld [vmem:[#allocation2 + $0x20] sm:$0xff]  ;;  %v1204_v8 = vld [vmem:[#allocation2 + $0x18] sm:$0xff] }
   0x8   :  { %v1213_v7 = vld [vmem:[#allocation2 + $0x60] sm:$0xff]  ;;  %v1212_v9 = vld [vmem:[#allocation2 + $0x58] sm:$0xff]  ;;  %v1203_v10 = vld [vmem:[#allocation2 + $0x10] sm:$0xff] }
   0x9   :  { %v1211_v11 = vld [vmem:[#allocation2 + $0x50] sm:$0xff]  ;;  %v1202_v12 = vld [vmem:[#allocation2 + $0x8] sm:$0xff]  ;;  %v1201_v13 = vld [vmem:[#allocation2] sm:$0xff] }
   0xa   :  { %99 = vmatpush.bf16.msra.mxu0 %v1207_v1  ;;  %v1353_v14 = vld [vmem:[%s1394_s0] sm:$0xff]  ;;  %v1210_v16 = vld [vmem:[#allocation2 + $0x48] sm:$0xff]  ;;  %v1224_v18 = vld [vmem:[#allocation2 + $0xb8] sm:$0xff] }
   0xb   :  { %180 = vmatpush.bf16.msra.mxu1 %v1215_v4  ;;  %v48_v15 = vpack.c.bf16 %v1353_v14, %v1353_v14  ;;  %v1209_v17 = vld [vmem:[#allocation2 + $0x40] sm:$0xff]  ;;  %260 = vmatpush.bf16.msra.mxu2 %v1224_v18  ;;  %v1223_v19 = vld [vmem:[#allocation2 + $0xb0] sm:$0xff]  ;;  %v1222_v20 = vld [vmem:[#allocation2 + $0xa8] sm:$0xff] }
   0xc   :  { %v1221_v21 = vld [vmem:[#allocation2 + $0xa0] sm:$0xff]  ;;  %v1220_v22 = vld [vmem:[#allocation2 + $0x98] sm:$0xff]  ;;  %v1219_v23 = vld [vmem:[#allocation2 + $0x90] sm:$0xff] }
   0xd   :  { %v1284_v24 = vld [vmem:[%s1396_s2] ss:$0 sm:$0xff]  ;;  %v1218_v30 = vld [vmem:[#allocation2 + $0x88] sm:$0xff]  ;;  %v1232_v32 = vld [vmem:[#allocation2 + $0xf8] sm:$0xff] }
   0xe   :  { %100 = vmatpush.bf16.msra.mxu0 %v1206_v3  ;;  %v1217_v31 = vld [vmem:[#allocation2 + $0x80] sm:$0xff]  ;;  %341 = vmatpush.bf16.msra.mxu3 %v1232_v32  ;;  %v1231_v33 = vld [vmem:[#allocation2 + $0xf0] sm:$0xff]  ;;  %v1230_v34 = vld [vmem:[#allocation2 + $0xe8] sm:$0xff] }
   0xf   :  { %181 = vmatpush.bf16.msra.mxu1 %v1214_v5  ;;  %261 = vmatpush.bf16.msra.mxu2 %v1223_v19  ;;  %v1229_v35 = vld [vmem:[#allocation2 + $0xe0] sm:$0xff]  ;;  %v1228_v36 = vld [vmem:[#allocation2 + $0xd8] sm:$0xff]  ;;  %v1227_v37 = vld [vmem:[#allocation2 + $0xd0] sm:$0xff] }
  0x10   :  { %v1285_v38 = vld [vmem:[%s1396_s2 + $0x1] ss:$0 sm:$0xff]  ;;  %v1226_v44 = vld [vmem:[#allocation2 + $0xc8] sm:$0xff]  ;;  %v1240_v46 = vld [vmem:[#allocation2 + $0x138] sm:$0xff] }
  0x11   :  { %v1225_v45 = vld [vmem:[#allocation2 + $0xc0] sm:$0xff]  ;;  %v1239_v47 = vld [vmem:[#allocation2 + $0x130] sm:$0xff]  ;;  %v1238_v48 = vld [vmem:[#allocation2 + $0x128] sm:$0xff] }
  0x12   :  { %101 = vmatpush.bf16.msra.mxu0 %v1205_v6  ;;  %342 = vmatpush.bf16.msra.mxu3 %v1231_v33  ;;  %v1237_v49 = vld [vmem:[#allocation2 + $0x120] sm:$0xff]  ;;  %v1236_v50 = vld [vmem:[#allocation2 + $0x118] sm:$0xff]  ;;  %v1235_v51 = vld [vmem:[#allocation2 + $0x110] sm:$0xff] }
  0x13   :  { %182 = vmatpush.bf16.msra.mxu1 %v1213_v7  ;;  %262 = vmatpush.bf16.msra.mxu2 %v1222_v20  ;;  %v1286_v52 = vld [vmem:[%s1396_s2 + $0x2] ss:$0 sm:$0xff]  ;;  %v1234_v58 = vld [vmem:[#allocation2 + $0x108] sm:$0xff]  ;;  %v1248_v60 = vld [vmem:[#allocation2 + $0x178] sm:$0xff] }
  0x14   :  { %v1233_v59 = vld [vmem:[#allocation2 + $0x100] sm:$0xff]  ;;  %v1247_v61 = vld [vmem:[#allocation2 + $0x170] sm:$0xff]  ;;  %v1246_v62 = vld [vmem:[#allocation2 + $0x168] sm:$0xff] }
  0x15   :  { %v1245_v63 = vld [vmem:[#allocation2 + $0x160] sm:$0xff]  ;;  %v1244_v0 = vld [vmem:[#allocation2 + $0x158] sm:$0xff]  ;;  %v1243_v1 = vld [vmem:[#allocation2 + $0x150] sm:$0xff] }
  0x16   :  { %102 = vmatpush.bf16.msra.mxu0 %v1204_v8  ;;  %343 = vmatpush.bf16.msra.mxu3 %v1230_v34  ;;  %v1287_v2 = vld [vmem:[%s1396_s2 + $0x3] ss:$0 sm:$0xff]  ;;  %v1242_v8 = vld [vmem:[#allocation2 + $0x148] sm:$0xff] }
  0x17   :  { %183 = vmatpush.bf16.msra.mxu1 %v1212_v9  ;;  %263 = vmatpush.bf16.msra.mxu2 %v1221_v21  ;;  %v1241_v9 = vld [vmem:[#allocation2 + $0x140] sm:$0xff] }
  0x1a   :  { %103 = vmatpush.bf16.msra.mxu0 %v1203_v10  ;;  %344 = vmatpush.bf16.msra.mxu3 %v1229_v35  ;;  %v1256_v10 = vld [vmem:[#allocation2 + $0x1b8] sm:$0xff] }
  0x1b   :  { %184 = vmatpush.bf16.msra.mxu1 %v1211_v11  ;;  %264 = vmatpush.bf16.msra.mxu2 %v1220_v22  ;;  %v1255_v11 = vld [vmem:[#allocation2 + $0x1b0] sm:$0xff] }
  0x1e   :  { %104 = vmatpush.bf16.msra.mxu0 %v1202_v12  ;;  %345 = vmatpush.bf16.msra.mxu3 %v1228_v36  ;;  %v1254_v12 = vld [vmem:[#allocation2 + $0x1a8] sm:$0xff] }
  0x1f   :  { %185 = vmatpush.bf16.msra.mxu1 %v1210_v16  ;;  %265 = vmatpush.bf16.msra.mxu2 %v1219_v23  ;;  %v1251_v16 = vld [vmem:[#allocation2 + $0x190] sm:$0xff]  ;;  %v1250_v23 = vld [vmem:[#allocation2 + $0x188] sm:$0xff] }
  0x22   :  { %105 = vmatpush.bf16.msra.mxu0 %v1201_v13  ;;  %346 = vmatpush.bf16.msra.mxu3 %v1227_v37  ;;  %v1253_v13 = vld [vmem:[#allocation2 + $0x1a0] sm:$0xff] }
  0x23   :  { %186 = vmatpush.bf16.msra.mxu1 %v1209_v17  ;;  %266 = vmatpush.bf16.msra.mxu2 %v1218_v30  ;;  %v1288_v17 = vld [vmem:[%s1396_s2 + $0x4] ss:$0 sm:$0xff]  ;;  %v1259_v30 = vld [vmem:[#allocation2 + $0x1d0] sm:$0xff] }
  0x25   :  { %106 = vmatmul.bf16.vlgmr.msra.gmra.mxu0 %v48_v15  ;;  %v1252_v15 = vld [vmem:[#allocation2 + $0x198] sm:$0xff] }
  0x26   :  { %347 = vmatpush.bf16.msra.mxu3 %v1226_v44  ;;  %422 = vmatpush.bf16.msrb.mxu0 %v1240_v46  ;;  %v1268_v44 = vld [vmem:[#allocation2 + $0x218] sm:$0xff] }
  0x27   :  { %267 = vmatpush.bf16.msra.mxu2 %v1217_v31  ;;  %503 = vmatpush.bf16.msrb.mxu1 %v1248_v60  ;;  %v1289_v31 = vld [vmem:[%s1396_s2 + $0x5] ss:$0 sm:$0xff] }
  0x2a   :  { %348 = vmatpush.bf16.msra.mxu3 %v1225_v45  ;;  %423 = vmatpush.bf16.msrb.mxu0 %v1239_v47  ;;  %v1267_v45 = vld [vmem:[#allocation2 + $0x210] sm:$0xff] }
  0x2b   :  { %504 = vmatpush.bf16.msrb.mxu1 %v1247_v61  ;;  %585 = vmatpush.bf16.msrb.mxu2 %v1256_v10 }
  0x2e   :  { %424 = vmatpush.bf16.msrb.mxu0 %v1238_v48 }
  0x2f   :  { %505 = vmatpush.bf16.msrb.mxu1 %v1246_v62  ;;  %586 = vmatpush.bf16.msrb.mxu2 %v1255_v11  ;;  %v1293_v11 = vld [vmem:[%s1396_s2 + $0x9] ss:$0 sm:$0xff] }
  0x32   :  { %425 = vmatpush.bf16.msrb.mxu0 %v1237_v49 }
  0x33   :  { %506 = vmatpush.bf16.msrb.mxu1 %v1245_v63  ;;  %587 = vmatpush.bf16.msrb.mxu2 %v1254_v12 }
  0x36   :  { %426 = vmatpush.bf16.msrb.mxu0 %v1236_v50 }
  0x37   :  { %507 = vmatpush.bf16.msrb.mxu1 %v1244_v0  ;;  %588 = vmatpush.bf16.msrb.mxu2 %v1253_v13 }
  0x3a   :  { %427 = vmatpush.bf16.msrb.mxu0 %v1235_v51  ;;  %v1266_v51 = vld [vmem:[#allocation2 + $0x208] sm:$0xff] }
  0x3b   :  { %508 = vmatpush.bf16.msrb.mxu1 %v1243_v1  ;;  %589 = vmatpush.bf16.msrb.mxu2 %v1252_v15  ;;  %v1274_v1 = vld [vmem:[#allocation2 + $0x248] sm:$0xff] }
  0x3e   :  { %428 = vmatpush.bf16.msrb.mxu0 %v1234_v58  ;;  %v1275_v58 = vld [vmem:[#allocation2 + $0x250] sm:$0xff] }
  0x3f   :  { %509 = vmatpush.bf16.msrb.mxu1 %v1242_v8  ;;  %590 = vmatpush.bf16.msrb.mxu2 %v1251_v16 }
  0x42   :  { %429 = vmatpush.bf16.msrb.mxu0 %v1233_v59  ;;  %v1291_v59 = vld [vmem:[%s1396_s2 + $0x7] ss:$0 sm:$0xff] }
  0x43   :  { %510 = vmatpush.bf16.msrb.mxu1 %v1241_v9  ;;  %591 = vmatpush.bf16.msrb.mxu2 %v1250_v23  ;;  %v841_v9 = vlaneseq }
  0x45   :  { %v842_v10 = vand.u32 127, %v841_v9 }
  0x47   :  { %vm843_vm0 = vcmp.lt.s32.totalorder %v842_v10, 4  ;;  %vm844_vm4 = vcmp.eq.s32.totalorder %v842_v10, 4 }
  0xa2   :  { %v107_v25 = vpop.f32.mrf.mxu0 }
  0xa3   :  { %v108_v26 = vadd.f32 %v1284_v24, %v107_v25  ;;  %v1249_v24 = vld [vmem:[#allocation2 + $0x180] sm:$0xff]  ;;  %v1264_v25 = vld [vmem:[#allocation2 + $0x1f8] sm:$0xff] }
  0xa4   :  { %592 = vmatpush.bf16.msrb.mxu2 %v1249_v24  ;;  %666 = vmatpush.bf16.msrb.mxu3 %v1264_v25 }
  0xa5   :  { %v111_v27 = vmax.f32 %v108_v26, 0.0  ;;  %v1263_v26 = vld [vmem:[#allocation2 + $0x1f0] sm:$0xff] }
  0xa7   :  { %v129_v28 = vpack.c.bf16 %v111_v27, %v111_v27  ;;  %v1262_v27 = vld [vmem:[#allocation2 + $0x1e8] sm:$0xff] }
  0xa8   :  { %667 = vmatpush.bf16.msrb.mxu3 %v1263_v26 }
  0xa9   :  { %187 = vmatmul.bf16.vlgmr.msra.gmra.mxu1 %v129_v28  ;;  %v1261_v28 = vld [vmem:[#allocation2 + $0x1e0] sm:$0xff] }
  0xaa   :  { %v109_v29 = vpop.f32.mrf.mxu0 }
  0xab   :  { %v1260_v29 = vld [vmem:[#allocation2 + $0x1d8] sm:$0xff] }
  0xac   :  { %668 = vmatpush.bf16.msrb.mxu3 %v1262_v27 }
  0xb0   :  { %669 = vmatpush.bf16.msrb.mxu3 %v1261_v28 }
  0xb4   :  { %670 = vmatpush.bf16.msrb.mxu3 %v1260_v29 }
  0xb8   :  { %671 = vmatpush.bf16.msrb.mxu3 %v1259_v30 }
 0x126   :  { %v188_v39 = vpop.f32.mrf.mxu1 }
 0x127   :  { %v189_v40 = vadd.f32 %v1285_v38, %v188_v39  ;;  %v1258_v38 = vld [vmem:[#allocation2 + $0x1c8] sm:$0xff]  ;;  %v1257_v39 = vld [vmem:[#allocation2 + $0x1c0] sm:$0xff] }
 0x128   :  { %672 = vmatpush.bf16.msrb.mxu3 %v1258_v38 }
 0x129   :  { %v192_v41 = vmax.f32 %v189_v40, 0.0  ;;  %v1272_v40 = vld [vmem:[#allocation2 + $0x238] sm:$0xff] }
 0x12a   :  { %747 = vmatpush.bf16.msra.mxu0 %v1272_v40 }
 0x12b   :  { %v210_v42 = vpack.c.bf16 %v192_v41, %v192_v41  ;;  %v1271_v41 = vld [vmem:[#allocation2 + $0x230] sm:$0xff] }
 0x12c   :  { %673 = vmatpush.bf16.msrb.mxu3 %v1257_v39 }
 0x12d   :  { %268 = vmatmul.bf16.vlgmr.msra.gmra.mxu2 %v210_v42  ;;  %v1270_v42 = vld [vmem:[#allocation2 + $0x228] sm:$0xff] }
 0x12e   :  { %v190_v43 = vpop.f32.mrf.mxu1  ;;  %748 = vmatpush.bf16.msra.mxu0 %v1271_v41 }
 0x12f   :  { %v1269_v43 = vld [vmem:[#allocation2 + $0x220] sm:$0xff] }
 0x132   :  { %749 = vmatpush.bf16.msra.mxu0 %v1270_v42 }
 0x136   :  { %750 = vmatpush.bf16.msra.mxu0 %v1269_v43 }
 0x13a   :  { %751 = vmatpush.bf16.msra.mxu0 %v1268_v44 }
 0x13e   :  { %752 = vmatpush.bf16.msra.mxu0 %v1267_v45 }
 0x142   :  { %753 = vmatpush.bf16.msra.mxu0 %v1266_v51 }
 0x1b0   :  { %v269_v53 = vpop.f32.mrf.mxu2 }
 0x1b1   :  { %v270_v54 = vadd.f32 %v1286_v52, %v269_v53  ;;  %v1265_v52 = vld [vmem:[#allocation2 + $0x200] sm:$0xff]  ;;  %v1280_v53 = vld [vmem:[#allocation2 + $0x278] sm:$0xff] }
 0x1b2   :  { %754 = vmatpush.bf16.msra.mxu0 %v1265_v52  ;;  %828 = vmatpush.bf16.msra.mxu1 %v1280_v53 }
 0x1b3   :  { %v273_v55 = vmax.f32 %v270_v54, 0.0  ;;  %v1279_v54 = vld [vmem:[#allocation2 + $0x270] sm:$0xff] }
 0x1b5   :  { %v291_v56 = vpack.c.bf16 %v273_v55, %v273_v55  ;;  %v1278_v55 = vld [vmem:[#allocation2 + $0x268] sm:$0xff] }
 0x1b6   :  { %829 = vmatpush.bf16.msra.mxu1 %v1279_v54 }
 0x1b7   :  { %349 = vmatmul.bf16.vlgmr.msra.gmra.mxu3 %v291_v56  ;;  %v1277_v56 = vld [vmem:[#allocation2 + $0x260] sm:$0xff] }
 0x1b8   :  { %v271_v57 = vpop.f32.mrf.mxu2 }
 0x1b9   :  { %v1276_v57 = vld [vmem:[#allocation2 + $0x258] sm:$0xff] }
 0x1ba   :  { %830 = vmatpush.bf16.msra.mxu1 %v1278_v55 }
 0x1be   :  { %831 = vmatpush.bf16.msra.mxu1 %v1277_v56 }
 0x1c2   :  { %832 = vmatpush.bf16.msra.mxu1 %v1276_v57 }
 0x1c6   :  { %833 = vmatpush.bf16.msra.mxu1 %v1275_v58 }
 0x1ca   :  { %834 = vmatpush.bf16.msra.mxu1 %v1274_v1 }
 0x23a   :  { %v350_v3 = vpop.f32.mrf.mxu3 }
 0x23b   :  { %v351_v4 = vadd.f32 %v1287_v2, %v350_v3  ;;  %v1273_v2 = vld [vmem:[#allocation2 + $0x240] sm:$0xff]  ;;  %v1292_v3 = vld [vmem:[%s1396_s2 + $0x8] ss:$0 sm:$0xff] }
 0x23c   :  { %835 = vmatpush.bf16.msra.mxu1 %v1273_v2 }
 0x23d   :  { %v354_v5 = vmax.f32 %v351_v4, 0.0 }
 0x23f   :  { %v372_v6 = vpack.c.bf16 %v354_v5, %v354_v5 }
 0x241   :  { %430 = vmatmul.bf16.vlgmr.msrb.gmra.mxu0 %v372_v6 }
 0x242   :  { %v352_v7 = vpop.f32.mrf.mxu3 }
 0x2be   :  { %v431_v18 = vpop.f32.mrf.mxu0 }
 0x2bf   :  { %v432_v19 = vadd.f32 %v1288_v17, %v431_v18 }
 0x2c1   :  { %v435_v20 = vmax.f32 %v432_v19, 0.0 }
 0x2c3   :  { %v453_v21 = vpack.c.bf16 %v435_v20, %v435_v20 }
 0x2c5   :  { %511 = vmatmul.bf16.vlgmr.msrb.gmra.mxu1 %v453_v21 }
 0x2c6   :  { %v433_v22 = vpop.f32.mrf.mxu0 }
 0x342   :  { %v512_v32 = vpop.f32.mrf.mxu1 }
 0x343   :  { %v513_v33 = vadd.f32 %v1289_v31, %v512_v32 }
 0x345   :  { %v516_v34 = vmax.f32 %v513_v33, 0.0 }
 0x347   :  { %v517_v35 = vadd.f32 %v516_v34, %v1353_v14  ;;  %v1290_v14 = vld [vmem:[%s1396_s2 + $0x6] ss:$0 sm:$0xff] }
 0x349   :  { %v535_v36 = vpack.c.bf16 %v517_v35, %v517_v35 }
 0x34a   :  { %v514_v37 = vpop.f32.mrf.mxu1 }
 0x34b   :  { %593 = vmatmul.bf16.vlgmr.msrb.gmra.mxu2 %v535_v36 }
 0x3ce   :  { %v594_v46 = vpop.f32.mrf.mxu2 }
 0x3cf   :  { %v595_v47 = vadd.f32 %v1290_v14, %v594_v46 }
 0x3d1   :  { %v598_v48 = vmax.f32 %v595_v47, 0.0 }
 0x3d3   :  { %v616_v49 = vpack.c.bf16 %v598_v48, %v598_v48 }
 0x3d5   :  { %674 = vmatmul.bf16.vlgmr.msrb.gmra.mxu3 %v616_v49 }
 0x3d6   :  { %v596_v50 = vpop.f32.mrf.mxu2 }
 0x458   :  { %v675_v60 = vpop.f32.mrf.mxu3 }
 0x459   :  { %v676_v61 = vadd.f32 %v1291_v59, %v675_v60 }
 0x45b   :  { %v679_v62 = vmax.f32 %v676_v61, 0.0 }
 0x45d   :  { %v697_v63 = vpack.c.bf16 %v679_v62, %v679_v62 }
 0x45f   :  { %755 = vmatmul.bf16.vlgmr.msra.gmra.mxu0 %v697_v63 }
 0x460   :  { %v677_v0 = vpop.f32.mrf.mxu3 }
 0x4dc   :  { %v756_v4 = vpop.f32.mrf.mxu0 }
 0x4dd   :  { %v757_v5 = vadd.f32 %v1292_v3, %v756_v4 }
 0x4df   :  { %v760_v6 = vmax.f32 %v757_v5, 0.0 }
 0x4e1   :  { %v778_v7 = vpack.c.bf16 %v760_v6, %v760_v6 }
 0x4e3   :  { %836 = vmatmul.bf16.vlgmr.msra.gmra.mxu1 %v778_v7 }
 0x4e4   :  { %v758_v8 = vpop.f32.mrf.mxu0 }
 0x560   :  { %v837_v12 = vpop.f32.mrf.mxu1 }
 0x561   :  { %v838_v13 = vadd.f32 %v1293_v11, %v837_v12 }
 0x563   :  { %v847_v15 = vsel %vm843_vm0, %v838_v13, -1e+30  ;;  %v873_v34 = vsel %vm844_vm4, %v838_v13, 0.0 }
 0x564   :  { %848 = vmax.xlane.f32.xlu0 %v847_v15 }
 0x568   :  { %v839_v16 = vpop.f32.mrf.mxu1 }
 0x5d7   :  { %v849_v17 = vpop.xlane.xlu0 %848 }
 0x5d8   :  { %v850_v18 = vsub.f32 %v838_v13, %v849_v17 }
 0x5da   :  { %v851_v19 = vmul.f32 1.442695, %v850_v18 }
 0x5dc   :  { %1294 = vpow2.f32 %v851_v19 }
 0x5e2   :  { %v1295_v20 = vpop.eup %1294 }
 0x5e3   :  { %v853_v21 = vsel %vm843_vm0, %v1295_v20, 0.0 }
 0x5e4   :  { %854 = vadd.xlane.f32.xlu0 %v853_v21 }
 0x657   :  { %v855_v22 = vpop.xlane.xlu0 %854 }
 0x658   :  { %1296 = vrcp.f32 %v855_v22  ;;  %v867_v26 = vand.u32 2147483648, %v855_v22  ;;  %v865_v28 = vand.u32 2147483647, %v855_v22  ;;  %vm861_vm2 = vweird.f32 %v855_v22 }
 0x65a   :  { %v868_v30 = vor.u32 1.1754944e-38, %v867_v26  ;;  %vm866_vm5 = vcmp.eq.f32.partialorder %v865_v28, 8.507059e+37 }
 0x65e   :  { %v1297_v23 = vpop.eup %1296 }
 0x65f   :  { %v857_v24 = vmul.f32 %v1297_v23, %v855_v22  ;;  %vm862_vm1 = vweird.f32 %v1297_v23 }
 0x660   :  { %vm863_vm3 = vmor %vm861_vm2, %vm862_vm1 }
 0x661   :  { %v858_v25 = vsub.f32 1.0, %v857_v24 }
 0x663   :  { %v859_v27 = vmul.f32 %v1297_v23, %v858_v25 }
 0x665   :  { %v860_v29 = vadd.f32 %v1297_v23, %v859_v27 }
 0x667   :  { %v864_v31 = vsel %vm863_vm3, %v1297_v23, %v860_v29 }
 0x668   :  { %v869_v32 = vsel %vm866_vm5, %v868_v30, %v864_v31 }
 0x669   :  { %v870_v33 = vmul.f32 %v869_v32, %v853_v21 }
 0x66b   :  { %v874_v35 = vsel %vm843_vm0, %v870_v33, %v873_v34 }
 0x66c   :  { %875 = vst [vmem:[%s1397_s3] sm:$0xff] %v874_v35 }
 0x66d   :  { %880 = vsyncpa [#allocation3], 1 }

</bundles_post_ra>
